<compile_context>
chip_gen: v7x
topology: tpu7x:2x2x1
jax: 0.10.0
libtpu: 0.0.40
codegen_flags: <defaults>
</compile_context>

<pallas_src>
import functools

import jax
import jax.numpy as jnp
import numpy as np
from jax import lax
from jax.experimental import pallas as pl
from jax.experimental.pallas import tpu as pltpu

LN_EPS = 1e-5   # torch.nn.LayerNorm default eps
LANE = 128


def _round_up(x, m):
    return (x + m - 1) // m * m


# ---------------- fused Pallas kernel ----------------

def _cvae_encoder_kernel(yx_ref, w0_ref, rows_ref, wh_ref, bh_ref, eps_ref,
                         zm_ref, klsum_ref, *, n_latent):
    """relu(LN([y|x]@W0+b0)) -> [mu|logstd] (lane-padded) -> [z|mu] slab + KL sum."""
    # Linear0: one MXU matmul (concat folded in the wrapper), f32 accumulation.
    h = jnp.dot(yx_ref[...], w0_ref[...], preferred_element_type=jnp.float32)
    h = h + rows_ref[0:1, :]                              # b0

    # LayerNorm (biased variance) + affine + ReLU; Dropout(p=0) is identity.
    mean = jnp.mean(h, axis=-1, keepdims=True)
    c = h - mean                                          # reuse centered value
    var = jnp.mean(c * c, axis=-1, keepdims=True)
    hn = c * lax.rsqrt(var + LN_EPS)
    hn = hn * rows_ref[1:2, :] + rows_ref[2:3, :]         # gamma, beta
    h = jnp.maximum(hn, 0.0)

    # Fused heads: one matmul -> [mu_pad | logstd_pad] (each half 128-lane aligned).
    heads = jnp.dot(h.astype(wh_ref.dtype), wh_ref[...],
                    preferred_element_type=jnp.float32) + bh_ref[...]
    l_pad = heads.shape[-1] // 2
    mu = heads[:, :l_pad]
    logstd = heads[:, l_pad:]
    sigma = jnp.exp(logstd)

    # Fused lane-dense output slab: [ z_pad | mu_pad ].
    # TODO(synk): eps could be generated in-kernel (pltpu.prng_seed + stateful_normal)
    # to drop one HBM input stream; kept as an input so the reference check is exact.
    zm_ref[:, :l_pad] = mu + sigma * eps_ref[...]
    zm_ref[:, l_pad:] = mu

    # Per-block KL partial *sum*, masked to the real latent lanes (padded lanes
    # have mu=logstd=0 -> sigma=1 -> would each add +0.5).  Mean finalized outside.
    lane = lax.broadcasted_iota(jnp.int32, mu.shape, 1)
    kl = sigma * sigma + mu * mu - logstd - 0.5
    klsum_ref[0, 0] = jnp.sum(jnp.where(lane < n_latent, kl, 0.0))


# ---------------- wrapper ----------------

def cvae_encoder_fused(y_flat, x_flat, params, eps, *, block_b=None,
                       compute_dtype=jnp.bfloat16):
    B, Fy = y_flat.shape
    Fx = x_flat.shape[1]
    F = Fy + Fx
    H = params["w0"].shape[1]
    L = params["latent_dims"]
    L_pad = params["w_heads"].shape[1] // 2

    # Fold torch.cat([y, x], 1) + flatten into one (B, F) operand -> Linear0 is
    # a single matmul.  Cast matmul operands to bf16 (f32 accumulation in-kernel);
    # in production the weights would simply be stored in bf16.
    yx = jnp.concatenate([y_flat, x_flat], axis=1).astype(compute_dtype)
    w0 = params["w0"].astype(compute_dtype)
    wh = params["w_heads"].astype(compute_dtype)
    eps_pad = jnp.pad(eps.astype(jnp.float32), ((0, 0), (0, L_pad - L)))

    if block_b is None:
        # Streamed tiles are tiny (block_b x {F, L_pad}); bigger blocks amortize the
        # ~0.35us/step overhead.  At the demo size this is a single block.
        block_b = B if B <= 512 else 512
        # TODO(synk): on v7x pick block_b <= B/2 when B is large so the "parallel"
        # batch grid (nb >= 2) shards across the two TensorCores.
    assert B % block_b == 0, "choose block_b that divides the batch"
    nb = B // block_b

    row = lambda i: (i, 0)   # batch-blocked operands
    rep = lambda i: (0, 0)   # weights / biases, resident across the grid

    # Re-derive the VMEM budget explicitly (v7x only has 64 MiB physical VMEM):
    # double-buffered streams + (conservatively double-counted) resident weights.
    idt = jnp.dtype(compute_dtype).itemsize
    stream_bytes = block_b * (F * idt + L_pad * 4 + 2 * L_pad * 4)
    resident_bytes = (F * H * idt + 8 * H * 4 + H * 2 * L_pad * idt + 2 * L_pad * 4)
    vmem_limit = int(min(max(4 << 20, 2 * (2 * stream_bytes + 2 * resident_bytes)),
                         128 << 20))
    # TODO(synk): on v7x also mark the grid-invariant weight specs single-buffered
    # (pipeline_mode=pl.Buffered(1)) and K-tile Linear0 if (F*H) bf16 still
    # exceeds the 64 MiB budget; unnecessary at these sizes.

    zm, kl_parts = pl.pallas_call(
        functools.partial(_cvae_encoder_kernel, n_latent=L),
        grid=(nb,),
        in_specs=[
            pl.BlockSpec((block_b, F), row),          # [y|x] flattened (bf16)
            pl.BlockSpec((F, H), rep),                # W0 unsplit (bf16)
            pl.BlockSpec((8, H), rep),                # packed rows: b0 / gamma / beta
            pl.BlockSpec((H, 2 * L_pad), rep),        # [Wmu | Wlogstd], lane-padded (bf16)
            pl.BlockSpec((1, 2 * L_pad), rep),        # [bmu | blogstd], lane-padded
            pl.BlockSpec((block_b, L_pad), row),      # eps ~ N(0,1), lane-padded
        ],
        out_specs=(
            pl.BlockSpec((block_b, 2 * L_pad), row),                                # [z|mu]
            pl.BlockSpec((1, 1), row, memory_space=pltpu.MemorySpace.SMEM),         # KL part
        ),
        out_shape=(
            jax.ShapeDtypeStruct((B, 2 * L_pad), jnp.float32),
            jax.ShapeDtypeStruct((nb, 1), jnp.float32),
        ),
        compiler_params=pltpu.CompilerParams(
            dimension_semantics=("parallel",),
            vmem_limit_bytes=vmem_limit),
    )(yx, w0, params["rows"], wh, params["b_heads"], eps_pad)

    z = zm[:, :L]
    mu = zm[:, L_pad:L_pad + L]
    kl = jnp.sum(kl_parts) / (B * L)   # .mean() over the (B, L) KL terms
    return z, mu, kl


def variational_encoder_forward(y, x, params, eps, return_latent=False, **kw):
    """Matches VariationalEncoder.forward (layers=1, dropout=0)."""
    B = y.shape[0]
    # flatten(cat([y,x],1), 1) == [flatten(y) | flatten(x)]
    y_flat = y.reshape(B, -1).astype(jnp.float32)
    x_flat = x.reshape(B, -1).astype(jnp.float32)
    z, mu, kl = cvae_encoder_fused(y_flat, x_flat, params, eps, **kw)
    if return_latent:
        return mu            # reference returns mu only in this branch
    return z, kl             # reference returns z and stores kl as self.kl


# ---------------- parameter init (deterministic, synthetic) ----------------

def init_params(fy, fx, hidden_dims, latent_dims, key):
    in_dims = fy + fx
    l_pad = _round_up(latent_dims, LANE)
    ks = jax.random.split(key, 6)
    s0 = 1.0 / np.sqrt(in_dims)
    sh = 1.0 / np.sqrt(hidden_dims)
    w0 = jax.random.uniform(ks[0], (in_dims, hidden_dims), jnp.float32, -s0, s0)
    b0 = jax.random.uniform(ks[1], (hidden_dims,), jnp.float32, -s0, s0)
    wm = jax.random.uniform(ks[2], (hidden_dims, latent_dims), jnp.float32, -sh, sh)
    bm = jax.random.uniform(ks[3], (latent_dims,), jnp.float32, -sh, sh)
    ws = jax.random.uniform(ks[4], (hidden_dims, latent_dims), jnp.float32, -sh, sh)
    bs = jax.random.uniform(ks[5], (latent_dims,), jnp.float32, -sh, sh)

    # Packed (8, H) row slab: row0 = b0, row1 = LN gamma (ones), row2 = LN beta (zeros).
    rows = jnp.zeros((8, hidden_dims), jnp.float32).at[0].set(b0).at[1].set(1.0)

    # Fused, lane-padded head params: [mu | logstd], each half padded to 128 lanes (zeros).
    w_heads = jnp.zeros((hidden_dims, 2 * l_pad), jnp.float32)
    w_heads = w_heads.at[:, :latent_dims].set(wm).at[:, l_pad:l_pad + latent_dims].set(ws)
    b_heads = jnp.zeros((1, 2 * l_pad), jnp.float32)
    b_heads = b_heads.at[0, :latent_dims].set(bm).at[0, l_pad:l_pad + latent_dims].set(bs)

    return {"w0": w0, "rows": rows, "w_heads": w_heads, "b_heads": b_heads,
            "latent_dims": latent_dims}


# ---------------- plain-JAX reference (correctness gate) ----------------

def reference_forward(y, x, params, eps, *, matmul_dtype=None):
    """matmul_dtype=bf16 mirrors the kernel's mixed-precision operand cast exactly."""
    B = y.shape[0]
    L = params["latent_dims"]
    L_pad = params["w_heads"].shape[1] // 2
    cast = (lambda a: a) if matmul_dtype is None else (
        lambda a: a.astype(matmul_dtype).astype(jnp.float32))
    yx = jnp.concatenate([y.reshape(B, -1), x.reshape(B, -1)], axis=1)
    b0, g0, beta0 = params["rows"][0:1], params["rows"][1:2], params["rows"][2:3]
    hp = jnp.dot(cast(yx), cast(params["w0"]), precision=lax.Precision.HIGHEST) + b0
    mean = hp.mean(-1, keepdims=True)
    var = ((hp - mean) ** 2).mean(-1, keepdims=True)
    h = (hp - mean) / jnp.sqrt(var + LN_EPS) * g0 + beta0
    h = jnp.maximum(h, 0.0)
    heads = jnp.dot(cast(h), cast(params["w_heads"]),
                    precision=lax.Precision.HIGHEST) + params["b_heads"]
    mu = heads[:, :L]
    logstd = heads[:, L_pad:L_pad + L]
    sigma = jnp.exp(logstd)
    z = mu + sigma * eps
    kl = (sigma ** 2 + mu ** 2 - logstd - 0.5).mean()
    return z, mu, kl


if __name__ == "__main__":
    key = jax.random.PRNGKey(0)
    k_y, k_x, k_p, k_eps = jax.random.split(key, 4)

    B, Y_FEAT, X_FEAT, HIDDEN, LATENT = 2, 16, 16, 32, 3

    y = jax.random.normal(k_y, (B, Y_FEAT), jnp.float32)
    x = jax.random.normal(k_x, (B, X_FEAT), jnp.float32)
    params = init_params(Y_FEAT, X_FEAT, HIDDEN, LATENT, k_p)
    # N(0,1) sample standing in for self.N.sample(mu.shape), drawn deterministically.
    eps = jax.random.normal(k_eps, (B, LATENT), jnp.float32)

    z, kl = variational_encoder_forward(y, x, params, eps)
    mu = variational_encoder_forward(y, x, params, eps, return_latent=True)
    jax.block_until_ready((z, kl, mu))

    assert z.shape == (B, LATENT)
    assert mu.shape == (B, LATENT)
    assert kl.shape == ()

    # Tight gate: reference computing the kernel's exact mixed-precision math.
    z_m, mu_m, kl_m = reference_forward(y, x, params, eps, matmul_dtype=jnp.bfloat16)
    np.testing.assert_allclose(np.asarray(z), np.asarray(z_m), atol=1e-4, rtol=1e-4)
    np.testing.assert_allclose(np.asarray(mu), np.asarray(mu_m), atol=1e-4, rtol=1e-4)
    np.testing.assert_allclose(np.asarray(kl), np.asarray(kl_m), atol=1e-4, rtol=1e-4)

    # Loose gate: full-f32 semantics of the original torch module (bf16 operand cast
    # is the only approximation).
    z_r, mu_r, kl_r = reference_forward(y, x, params, eps)
    np.testing.assert_allclose(np.asarray(z), np.asarray(z_r), atol=5e-2, rtol=5e-2)
    np.testing.assert_allclose(np.asarray(mu), np.asarray(mu_r), atol=5e-2, rtol=5e-2)
    np.testing.assert_allclose(np.asarray(kl), np.asarray(kl_r), atol=5e-2, rtol=5e-2)

    print("KERNEL_OK")
</pallas_src>

<mosaic_0001>
module attributes {stable_mosaic.version = 11 : i64} {
  func.func @_cvae_encoder_kernel(%arg0: i32, %arg1: memref<2x32xbf16, #tpu.memory_space<vmem>>, %arg2: memref<32x32xbf16, #tpu.memory_space<vmem>>, %arg3: memref<8x32xf32, #tpu.memory_space<vmem>>, %arg4: memref<32x256xbf16, #tpu.memory_space<vmem>>, %arg5: memref<1x256xf32, #tpu.memory_space<vmem>>, %arg6: memref<2x128xf32, #tpu.memory_space<vmem>>, %arg7: memref<2x256xf32, #tpu.memory_space<vmem>>, %arg8: memref<1x1xf32, #tpu.memory_space<smem>>) attributes {dimension_semantics = [#tpu.dimension_semantics<parallel>], iteration_bounds = array<i64: 1>, scalar_prefetch = 0 : i64, scratch_operands = 0 : i64, tpu.core_type = #tpu.core_type<tc>, window_params = [{transform_indices = @transform_0, window_bounds = array<i64: 2, 32>}, {pipeline_mode = #tpu.pipeline_mode<synchronous>, transform_indices = @transform_1, window_bounds = array<i64: 32, 32>}, {pipeline_mode = #tpu.pipeline_mode<synchronous>, transform_indices = @transform_2, window_bounds = array<i64: 8, 32>}, {pipeline_mode = #tpu.pipeline_mode<synchronous>, transform_indices = @transform_3, window_bounds = array<i64: 32, 256>}, {pipeline_mode = #tpu.pipeline_mode<synchronous>, transform_indices = @transform_4, window_bounds = array<i64: 1, 256>}, {transform_indices = @transform_5, window_bounds = array<i64: 2, 128>}, {transform_indices = @transform_6, window_bounds = array<i64: 2, 256>}, {transform_indices = @transform_7, window_bounds = array<i64: 1, 1>}]} {
    %c0 = arith.constant 0 : index
    %c0_0 = arith.constant 0 : index
    %0 = vector.load %arg1[%c0, %c0_0] : memref<2x32xbf16, #tpu.memory_space<vmem>>, vector<2x32xbf16>
    %c0_1 = arith.constant 0 : index
    %c0_2 = arith.constant 0 : index
    %1 = vector.load %arg2[%c0_1, %c0_2] : memref<32x32xbf16, #tpu.memory_space<vmem>>, vector<32x32xbf16>
    %cst = arith.constant dense<0.000000e+00> : vector<2x32xf32>
    %2 = tpu.matmul %0, %1, %cst {dimension_numbers = #tpu.dot_dimension_numbers<[1], [0], [0], [1], [0, 0, 1, 1], [], []>} : vector<2x32xbf16>, vector<32x32xbf16>, vector<2x32xf32> -> vector<2x32xf32>
    %c0_3 = arith.constant 0 : index
    %c0_4 = arith.constant 0 : index
    %3 = vector.load %arg3[%c0_3, %c0_4] : memref<8x32xf32, #tpu.memory_space<vmem>>, vector<1x32xf32>
    %4 = vector.broadcast %3 : vector<1x32xf32> to vector<2x32xf32>
    %5 = arith.addf %2, %4 : vector<2x32xf32>
    %cst_5 = arith.constant dense<0.000000e+00> : vector<2xf32>
    %6 = vector.multi_reduction <add>, %5, %cst_5 [1] : vector<2x32xf32> to vector<2xf32>
    %7 = vector.shape_cast %6 : vector<2xf32> to vector<2x1xf32>
    %cst_6 = arith.constant 3.200000e+01 : f32
    %8 = vector.broadcast %cst_6 : f32 to vector<2x1xf32>
    %9 = arith.divf %7, %8 : vector<2x1xf32>
    %10 = vector.broadcast %9 : vector<2x1xf32> to vector<2x32xf32>
    %11 = arith.subf %5, %10 : vector<2x32xf32>
    %12 = arith.mulf %11, %11 : vector<2x32xf32>
    %cst_7 = arith.constant dense<0.000000e+00> : vector<2xf32>
    %13 = vector.multi_reduction <add>, %12, %cst_7 [1] : vector<2x32xf32> to vector<2xf32>
    %14 = vector.shape_cast %13 : vector<2xf32> to vector<2x1xf32>
    %cst_8 = arith.constant 3.200000e+01 : f32
    %15 = vector.broadcast %cst_8 : f32 to vector<2x1xf32>
    %16 = arith.divf %14, %15 : vector<2x1xf32>
    %cst_9 = arith.constant 9.99999974E-6 : f32
    %17 = vector.broadcast %cst_9 : f32 to vector<2x1xf32>
    %18 = arith.addf %16, %17 : vector<2x1xf32>
    %19 = math.rsqrt %18 : vector<2x1xf32>
    %20 = vector.broadcast %19 : vector<2x1xf32> to vector<2x32xf32>
    %21 = arith.mulf %11, %20 : vector<2x32xf32>
    %c1 = arith.constant 1 : index
    %c0_10 = arith.constant 0 : index
    %22 = vector.load %arg3[%c1, %c0_10] : memref<8x32xf32, #tpu.memory_space<vmem>>, vector<1x32xf32>
    %23 = vector.broadcast %22 : vector<1x32xf32> to vector<2x32xf32>
    %24 = arith.mulf %21, %23 : vector<2x32xf32>
    %c2 = arith.constant 2 : index
    %c0_11 = arith.constant 0 : index
    %25 = vector.load %arg3[%c2, %c0_11] : memref<8x32xf32, #tpu.memory_space<vmem>>, vector<1x32xf32>
    %26 = vector.broadcast %25 : vector<1x32xf32> to vector<2x32xf32>
    %27 = arith.addf %24, %26 : vector<2x32xf32>
    %cst_12 = arith.constant 0.000000e+00 : f32
    %28 = vector.broadcast %cst_12 : f32 to vector<2x32xf32>
    %29 = arith.maximumf %27, %28 : vector<2x32xf32>
    %30 = arith.truncf %29 : vector<2x32xf32> to vector<2x32xbf16>
    %c0_13 = arith.constant 0 : index
    %c0_14 = arith.constant 0 : index
    %31 = vector.load %arg4[%c0_13, %c0_14] : memref<32x256xbf16, #tpu.memory_space<vmem>>, vector<32x256xbf16>
    %cst_15 = arith.constant dense<0.000000e+00> : vector<2x256xf32>
    %32 = tpu.matmul %30, %31, %cst_15 {dimension_numbers = #tpu.dot_dimension_numbers<[1], [0], [0], [1], [0, 0, 1, 1], [], []>} : vector<2x32xbf16>, vector<32x256xbf16>, vector<2x256xf32> -> vector<2x256xf32>
    %c0_16 = arith.constant 0 : index
    %c0_17 = arith.constant 0 : index
    %33 = vector.load %arg5[%c0_16, %c0_17] : memref<1x256xf32, #tpu.memory_space<vmem>>, vector<1x256xf32>
    %34 = vector.broadcast %33 : vector<1x256xf32> to vector<2x256xf32>
    %35 = arith.addf %32, %34 : vector<2x256xf32>
    %36 = vector.extract_strided_slice %35 {offsets = [0, 0], sizes = [2, 128], strides = [1, 1]} : vector<2x256xf32> to vector<2x128xf32>
    %37 = vector.extract_strided_slice %35 {offsets = [0, 128], sizes = [2, 128], strides = [1, 1]} : vector<2x256xf32> to vector<2x128xf32>
    %38 = math.exp %37 : vector<2x128xf32>
    %c0_18 = arith.constant 0 : index
    %c0_19 = arith.constant 0 : index
    %39 = vector.load %arg6[%c0_18, %c0_19] : memref<2x128xf32, #tpu.memory_space<vmem>>, vector<2x128xf32>
    %40 = arith.mulf %38, %39 : vector<2x128xf32>
    %41 = arith.addf %36, %40 : vector<2x128xf32>
    %c0_20 = arith.constant 0 : index
    %c0_21 = arith.constant 0 : index
    %42 = vector.load %arg7[%c0_20, %c0_21] : memref<2x256xf32, #tpu.memory_space<vmem>>, vector<2x128xf32>
    tpu.vector_store %arg7[%c0_20, %c0_21], %41 {strides = array<i32>} : memref<2x256xf32, #tpu.memory_space<vmem>>, vector<2x128xf32>,
    %c0_22 = arith.constant 0 : index
    %c128 = arith.constant 128 : index
    %43 = vector.load %arg7[%c0_22, %c128] : memref<2x256xf32, #tpu.memory_space<vmem>>, vector<2x128xf32>
    tpu.vector_store %arg7[%c0_22, %c128], %36 {strides = array<i32>} : memref<2x256xf32, #tpu.memory_space<vmem>>, vector<2x128xf32>,
    %44 = tpu.iota {dimensions = array<i32: 1>} : vector<2x128xi32>
    %45 = arith.mulf %38, %38 : vector<2x128xf32>
    %46 = arith.mulf %36, %36 : vector<2x128xf32>
    %47 = arith.addf %45, %46 : vector<2x128xf32>
    %48 = arith.subf %47, %37 : vector<2x128xf32>
    %cst_23 = arith.constant 5.000000e-01 : f32
    %49 = vector.broadcast %cst_23 : f32 to vector<2x128xf32>
    %50 = arith.subf %48, %49 : vector<2x128xf32>
    %c3_i32 = arith.constant 3 : i32
    %51 = vector.broadcast %c3_i32 : i32 to vector<2x128xi32>
    %52 = arith.cmpi slt, %44, %51 : vector<2x128xi32>
    %cst_24 = arith.constant 0.000000e+00 : f32
    %53 = vector.broadcast %cst_24 : f32 to vector<2x128xf32>
    %54 = arith.select %52, %50, %53 : vector<2x128xi1>, vector<2x128xf32>
    %55 = vector.shape_cast %54 : vector<2x128xf32> to vector<1x2x128xf32>
    %cst_25 = arith.constant dense<0.000000e+00> : vector<1xf32>
    %56 = vector.multi_reduction <add>, %55, %cst_25 [1, 2] : vector<1x2x128xf32> to vector<1xf32>
    %57 = vector.shape_cast %56 : vector<1xf32> to vector<1x1x1xf32>
    %58 = vector.extract %57[0, 0, 0] : f32 from vector<1x1x1xf32>
    %c0_26 = arith.constant 0 : index
    %c0_27 = arith.constant 0 : index
    %59 = memref.load %arg8[%c0_26, %c0_27] : memref<1x1xf32, #tpu.memory_space<smem>>
    memref.store %58, %arg8[%c0_26, %c0_27] : memref<1x1xf32, #tpu.memory_space<smem>>
    return
  }
  func.func @transform_0(%arg0: i32) -> (i32, i32) {
    %c0_i32 = arith.constant 0 : i32
    %c0_i32_0 = arith.constant 0 : i32
    return %arg0, %c0_i32 : i32, i32
  }
  func.func @transform_1(%arg0: i32) -> (i32, i32) {
    %c0_i32 = arith.constant 0 : i32
    %c0_i32_0 = arith.constant 0 : i32
    %c0_i32_1 = arith.constant 0 : i32
    return %c0_i32, %c0_i32_0 : i32, i32
  }
  func.func @transform_2(%arg0: i32) -> (i32, i32) {
    %c0_i32 = arith.constant 0 : i32
    %c0_i32_0 = arith.constant 0 : i32
    %c0_i32_1 = arith.constant 0 : i32
    return %c0_i32, %c0_i32_0 : i32, i32
  }
  func.func @transform_3(%arg0: i32) -> (i32, i32) {
    %c0_i32 = arith.constant 0 : i32
    %c0_i32_0 = arith.constant 0 : i32
    %c0_i32_1 = arith.constant 0 : i32
    return %c0_i32, %c0_i32_0 : i32, i32
  }
  func.func @transform_4(%arg0: i32) -> (i32, i32) {
    %c0_i32 = arith.constant 0 : i32
    %c0_i32_0 = arith.constant 0 : i32
    %c0_i32_1 = arith.constant 0 : i32
    return %c0_i32, %c0_i32_0 : i32, i32
  }
  func.func @transform_5(%arg0: i32) -> (i32, i32) {
    %c0_i32 = arith.constant 0 : i32
    %c0_i32_0 = arith.constant 0 : i32
    return %arg0, %c0_i32 : i32, i32
  }
  func.func @transform_6(%arg0: i32) -> (i32, i32) {
    %c0_i32 = arith.constant 0 : i32
    %c0_i32_0 = arith.constant 0 : i32
    return %arg0, %c0_i32 : i32, i32
  }
  func.func @transform_7(%arg0: i32) -> (i32, i32) {
    %c0_i32 = arith.constant 0 : i32
    %c0_i32_0 = arith.constant 0 : i32
    return %arg0, %c0_i32 : i32, i32
  }
}

</mosaic_0001>

<bundles_post_ra>
// kernel: tpu_custom_call.1
= control target key start
LH: loop header
LB: loop body
LE: loop exit
PB: predicated region body
PF: predicated region fallthrough
CT: control target
= control target key end

     0   :  { %13 = vsyncpa [#allocation3], 0  ;;  %s626_s0 = inlined_call_operand.hbm [shape: bf16[2,32], index: 0, kind: input, shape index: {}]   ;;  %s627_s1 = inlined_call_operand.hbm [shape: bf16[32,32], index: 1, kind: input, shape index: {}]   ;;  %s628_s2 = inlined_call_operand.hbm [shape: f32[8,32], index: 2, kind: input, shape index: {}]   ;;  %s629_s3 = inlined_call_operand.hbm [shape: bf16[32,256], index: 3, kind: input, shape index: {}]   ;;  %s630_s4 = inlined_call_operand.vmem [shape: f32[1,256], index: 4, kind: input, shape index: {}]   ;;  %s631_s5 = inlined_call_operand.vmem [shape: f32[2,128], index: 5, kind: input, shape index: {}]   ;;  %s632_s6 = inlined_call_operand.hbm [shape: f32[2,256], index: 6, kind: output, shape index: {0}]   ;;  %s633_s7 = inlined_call_operand.hbm [shape: f32[1,1], index: 7, kind: output, shape index: {1}]  }
   0x1   :  { %14 = vsyncpa [#allocation7], 0 }
   0x2   :  { %15 = vsyncpa [#allocation10], 0 }
   0x3   :  { %16 = vsyncpa [#allocation4], 0 }
   0x4   :  { %17 = vsyncpa [#allocation5], 0  ;;  %s493_s24 = smov [#allocation6]   ;;  %s363_s28 = scalar_lea.hbm %s627_s1, 256 }
   0x5   :  { %s33_s25 = sshll.u32 %s493_s24, 4  ;;  %p364_p0 = scmp.ne.s32.totalorder %s627_s1, %s363_s28  ;;  %s34_s25 = int_to_ptr.vmem [resolvable:$true] %s33_s25 }
   0x6   :  { %p367_p1 = scmp.lt.u32.totalorder %s363_s28, %s627_s1 }
   0x8   :  { %p369_p2 = pnand %p367_p1, %p364_p0 }
   0xa   :  { %372 = shalt.err (!%p369_p2)
}
   0xb   :  { %s373_s10 = scalar_lea.vmem %s34_s25, 256  ;;  %p378_p4 = scmp.lt.s32.totalorder %s34_s25, %s34_s25 }
   0xc   :  { %p374_p3 = scmp.ne.s32.totalorder %s34_s25, %s373_s10  ;;  %p379_p5 = scmp.lt.s32.totalorder %s373_s10, %s373_s10 }
   0xe   :  { %p380_p6 = por %p379_p5, %p378_p4 }
  0x10   :  { %p381_p7 = pnand %p380_p6, %p374_p3 }
  0x12   :  { %384 = shalt.err (!%p381_p7)
}
  0x13   :  { %s494_s11 = smov 64   ;;  %s495_s12 = smov 4  }
  0x14   :  { %39 = dma.hbm_to_vmem [thread:$0]  %s627_s1, 256, %s34_s25, [#allocation7], %s494_s11, %s494_s11, %s495_s12  }
  0x15   :  { %s496_s15 = smov [#allocation2]   ;;  %s497_s17 = smov [#allocation8]  }
  0x16   :  { %s24_s16 = sshll.u32 %s496_s15, 4  ;;  %s46_s18 = sshll.u32 %s497_s17, 4  ;;  %s25_s16 = int_to_ptr.vmem [resolvable:$true] %s24_s16  ;;  %s47_s18 = int_to_ptr.vmem [resolvable:$true] %s46_s18 }
  0x17   :  { %s385_s21 = scalar_lea.hbm %s626_s0, 16 }
  0x18   :  { %p386_p8 = scmp.ne.s32.totalorder %s626_s0, %s385_s21  ;;  %p389_p9 = scmp.lt.u32.totalorder %s385_s21, %s626_s0 }
  0x1a   :  { %p391_p10 = pnand %p389_p9, %p386_p8 }
  0x1c   :  { %394 = shalt.err (!%p391_p10)
}
  0x1d   :  { %s395_s1 = scalar_lea.vmem %s25_s16, 16  ;;  %s399_s25 = scalar_lea.vmem %s25_s16, 32 }
  0x1e   :  { %p396_p11 = scmp.ne.s32.totalorder %s25_s16, %s395_s1  ;;  %p400_p12 = scmp.lt.s32.totalorder %s25_s16, %s25_s16 }
  0x1f   :  { %p401_p13 = scmp.lt.s32.totalorder %s399_s25, %s395_s1 }
  0x21   :  { %p402_p0 = por %p401_p13, %p400_p12 }
  0x23   :  { %p403_p1 = pnand %p402_p0, %p396_p11 }
  0x25   :  { %406 = shalt.err (!%p403_p1)
}
  0x26   :  { %27 = dma.hbm_to_vmem [thread:$0]  %s626_s0, 16, %s25_s16, [#allocation3]  }
  0x27   :  { %s407_s8 = scalar_lea.hbm %s628_s2, 128 }
  0x28   :  { %p408_p2 = scmp.ne.s32.totalorder %s628_s2, %s407_s8  ;;  %p411_p3 = scmp.lt.u32.totalorder %s407_s8, %s628_s2 }
  0x2a   :  { %p413_p4 = pnand %p411_p3, %p408_p2 }
  0x2c   :  { %416 = shalt.err (!%p413_p4)
}
  0x2d   :  { %s417_s13 = scalar_lea.vmem %s47_s18, 128  ;;  %p422_p6 = scmp.lt.s32.totalorder %s47_s18, %s47_s18 }
  0x2e   :  { %p418_p5 = scmp.ne.s32.totalorder %s47_s18, %s417_s13  ;;  %p423_p7 = scmp.lt.s32.totalorder %s417_s13, %s417_s13 }
  0x30   :  { %p424_p8 = por %p423_p7, %p422_p6 }
  0x32   :  { %p425_p9 = pnand %p424_p8, %p418_p5 }
  0x34   :  { %428 = shalt.err (!%p425_p9)
}
  0x35   :  { %49 = dma.hbm_to_vmem [thread:$0]  %s628_s2, 128, %s47_s18, [#allocation7]  }
  0x36   :  { %s498_s15 = smov [#allocation9]   ;;  %s429_s20 = scalar_lea.hbm %s629_s3, 512 }
  0x37   :  { %s55_s16 = sshll.u32 %s498_s15, 4  ;;  %p430_p10 = scmp.ne.s32.totalorder %s629_s3, %s429_s20  ;;  %s56_s16 = int_to_ptr.vmem [resolvable:$true] %s55_s16 }
  0x38   :  { %p433_p11 = scmp.lt.u32.totalorder %s429_s20, %s629_s3 }
  0x3a   :  { %p435_p12 = pnand %p433_p11, %p430_p10 }
  0x3c   :  { %438 = shalt.err (!%p435_p12)
}
  0x3d   :  { %s439_s26 = scalar_lea.vmem %s56_s16, 512  ;;  %p444_p0 = scmp.lt.s32.totalorder %s56_s16, %s56_s16 }
  0x3e   :  { %p440_p13 = scmp.ne.s32.totalorder %s56_s16, %s439_s26  ;;  %p445_p1 = scmp.lt.s32.totalorder %s439_s26, %s439_s26 }
  0x40   :  { %p446_p2 = por %p445_p1, %p444_p0 }
  0x42   :  { %p447_p3 = pnand %p446_p2, %p440_p13 }
  0x44   :  { %450 = shalt.err (!%p447_p3)
}
  0x45   :  { %s499_s2 = smov 128   ;;  %s500_s18 = smov 8  }
  0x46   :  { %61 = dma.hbm_to_vmem [thread:$0]  %s629_s3, 512, %s56_s16, [#allocation10], %s499_s2, %s499_s2, %s500_s18  }
  0x47   :  { %483 = dma.done.wait [#allocation3], 16  }
  0x48   :  { %484 = vsyncadd [#allocation3], 4294967280 }
  0x49   :  { %485 = dma.done.wait [#allocation7], 384  }
  0x4a   :  { %486 = vsyncadd [#allocation7], 4294966912 }
  0x4b   :  { %487 = dma.done.wait [#allocation10], 512  }
  0x4c   :  { %488 = vsyncadd [#allocation10], 4294966784  ;;  %v501_v0 = vmov 0.0   ;;  %vm502_vm0 = vmmov 0   ;;  %v351_v1 = vld [vmem:[#allocation6] sm:$0xff]   ;;  %v352_v2 = vld [vmem:[#allocation6 + $0x8] sm:$0xff]   ;;  %v180_v32 = vlaneseq }
  0x4d   :  { %328 = vmatprep.subr.bf16.mxu0 %v501_v0  ;;  %332 = vmatprep.mubr.msk.bf16.mxu0 %vm502_vm0, %v501_v0  ;;  %v79_v3 = vld [vmem:[#allocation2] sm:$0x1]  ;;  %vm101_vm1 = vcmask 261120   ;;  %v313_v4 = vld [vmem:[#allocation8] ss:$0 sm:$0xff]  ;;  %vm145_vm2 = vcmask 254976  }
  0x4e   :  { %329 = vmatpush3.bf16.msra.mxu0 %v351_v1  ;;  %v353_v16 = vld [vmem:[#allocation9 + $0x4] ss:$8 sps:$4 sm:$0xff]   ;;  %v355_v17 = vld [vmem:[#allocation9] ss:$8 sps:$4 sm:$0xff]   ;;  %v356_v18 = vld [vmem:[#allocation9 + $0x14] ss:$8 sps:$4 sm:$0xff]  }
  0x4f   :  { %330 = vmatprep.subr.bf16.mxu0 %v501_v0  ;;  %213 = vmatprep.subr.bf16.mxu1 %v353_v16  ;;  %v503_v19 = vmov 0   ;;  %v358_v20 = vld [vmem:[#allocation9 + $0x10] ss:$8 sps:$4 sm:$0xff]   ;;  %v181_v33 = vshrl.u32 %v180_v32, 7  ;;  %v178_v35 = vld [vmem:[%s630_s4] sm:$0x3] }
  0x50   :  { %245 = vmatprep.mubr.bf16.mxu1 %v503_v19  ;;  %214 = vmatpush1.bf16.msra.mxu1 %v355_v17  ;;  %v317_v25 = vld [vmem:[#allocation8 + $0x1] ss:$0 sm:$0xff]  ;;  %v318_v27 = vld [vmem:[#allocation8 + $0x2] ss:$0 sm:$0xff]  ;;  %v256_v46 = vld [vmem:[%s631_s5] sm:$0x3] }
  0x51   :  { %215 = vmatprep.subr.bf16.mxu1 %v356_v18  ;;  %v182_v34 = vsub.s32 0, %v181_v33  ;;  %v186_v36 = vsub.s32 1, %v181_v33  ;;  %v262_v51 = vand.u32 127, %v180_v32  ;;  %vm270_vm4 = vcmask 1041408   ;;  %s504_s4 = smov [#allocation11]  }
  0x52   :  { %331 = vmatpush3.bf16.msra.mxu0 %v352_v2  ;;  %s289_s30 = sshll.u32 %s504_s4, 4  ;;  %s290_s30 = int_to_ptr.vmem [resolvable:$true] %s289_s30 }
  0x53   :  { %v183_v37 = vrot.slane %v178_v35, %v182_v34  ;;  %v187_v38 = vrot.slane %v178_v35, %v186_v36  ;;  %vm268_vm3 = vcmp.lt.s32.totalorder %v262_v51, 3  ;;  %s451_s8 = scalar_lea.vmem %s290_s30, 64  ;;  %p456_p5 = scmp.lt.s32.totalorder %s290_s30, %s290_s30 }
  0x54   :  { %216 = vmatpush1.bf16.msra.mxu1 %v358_v20  ;;  %p452_p4 = scmp.ne.s32.totalorder %s290_s30, %s451_s8  ;;  %p457_p6 = scmp.lt.s32.totalorder %s451_s8, %s451_s8 }
  0x55   :  { %333 = vmatmul.mubr.msk.bf16.vlgmr.msra.gmra.mrb[0].mxu0 %vm101_vm1, %v79_v3 }
  0x56   :  { %p458_p7 = por %p457_p6, %p456_p5 }
  0x58   :  { %p459_p8 = pnand %p458_p7, %p452_p4 }
 0x128   :  { %v139_v5 = vpop.f32.mrb[0].mxu0 }
 0x129   :  { %v140_v6 = vadd.f32 %v313_v4, %v139_v5  ;;  %v334_v7 = vpop.f32.mrb[1].mxu0 }
 0x12a   :  { %v142_v8 = vpop.f32.mrb[2].mxu0 }
 0x12b   :  { %v335_v9 = vpop.f32.mrb[3].mxu0  ;;  %v146_v10 = vsel %vm145_vm2, %v140_v6, 0.0 }
 0x12c   :  { %147 = vadd.xlane.f32.xlu0 %v146_v10 }
 0x1b9   :  { %v148_v11 = vpop.xlane.xlu0 %147 }
 0x1ba   :  { %v150_v12 = vmul.f32 0.03125, %v148_v11 }
 0x1bc   :  { %v151_v13 = vsub.f32 %v140_v6, %v150_v12 }
 0x1be   :  { %v152_v14 = vmul.f32 %v151_v13, %v151_v13 }
 0x1c0   :  { %v153_v15 = vsel %vm145_vm2, %v152_v14, 0.0 }
 0x1c1   :  { %154 = vadd.xlane.f32.xlu0 %v153_v15 }
 0x24e   :  { %v155_v21 = vpop.xlane.xlu0 %154 }
 0x24f   :  { %v156_v22 = vmul.f32 0.03125, %v155_v21 }
 0x251   :  { %v157_v23 = vadd.f32 1e-05, %v156_v22 }
 0x253   :  { %359 = vrsqrt.f32 %v157_v23 }
 0x25d   :  { %v360_v24 = vpop.eup %359 }
 0x25e   :  { %v159_v26 = vmul.f32 %v360_v24, %v151_v13 }
 0x260   :  { %v165_v28 = vmul.f32 %v317_v25, %v159_v26 }
 0x262   :  { %v171_v29 = vadd.f32 %v318_v27, %v165_v28 }
 0x264   :  { %v172_v30 = vmax.f32 %v171_v29, 0.0 }
 0x266   :  { %v173_v31 = vpack.c.bf16 %v172_v30, %v172_v30 }
 0x268   :  { %323 = vmatmul.mubr.msk.bf16.vlgmr.msra.gmra.mrb[0].mxu1 %vm101_vm1, %v173_v31 }
 0x33b   :  { %v247_v39 = vpop.f32.mrb[0].mxu1 }
 0x33c   :  { %v248_v40 = vadd.f32 %v247_v39, %v183_v37  ;;  %v249_v41 = vpop.f32.mrb[1].mxu1 }
 0x33d   :  { %v250_v42 = vadd.f32 %v249_v41, %v187_v38  ;;  %v251_v43 = vpop.f32.mrb[2].mxu1 }
 0x33e   :  { %260 = vst [vmem:[#allocation11 + $0x2] sm:$0x3] %v248_v40  ;;  %v252_v44 = vpop.f32.mrb[3].mxu1  ;;  %v264_v48 = vmul.f32 %v248_v40, %v248_v40 }
 0x33f   :  { %v254_v45 = vmul.f32 1.442695, %v250_v42 }
 0x341   :  { %361 = vpow2.f32 %v254_v45 }
 0x34b   :  { %v362_v47 = vpop.eup %361 }
 0x34c   :  { %v263_v49 = vmul.f32 %v362_v47, %v362_v47  ;;  %v257_v50 = vmul.f32 %v362_v47, %v256_v46 }
 0x34e   :  { %v265_v52 = vadd.f32 %v264_v48, %v263_v49  ;;  %v258_v53 = vadd.f32 %v257_v50, %v248_v40 }
 0x350   :  { %v266_v54 = vsub.f32 %v265_v52, %v250_v42  ;;  %259 = vst [vmem:[#allocation11] sm:$0x3] %v258_v53 }
 0x352   :  { %v324_v55 = vadd.f32 -0.5, %v266_v54 }
 0x354   :  { %v269_v56 = vsel %vm268_vm3, %v324_v55, 0.0 }
 0x355   :  { %v271_v57 = vsel %vm270_vm4, %v269_v56, 0.0 }
 0x356   :  { %272 = vadd.xlane.f32.xlu1 %v271_v57 }
 0x357   :  { %462 = shalt.err (!%p459_p8)
}
 0x358   :  { %s463_s10 = scalar_lea.hbm %s632_s6, 64 }
 0x359   :  { %p464_p9 = scmp.ne.s32.totalorder %s632_s6, %s463_s10  ;;  %p467_p10 = scmp.lt.u32.totalorder %s463_s10, %s632_s6 }
 0x35b   :  { %p469_p11 = pnand %p467_p10, %p464_p9 }
 0x35d   :  { %472 = shalt.err (!%p469_p11)
}
 0x35e   :  { %292 = dma.vmem_to_hbm [thread:$0]  %s290_s30, 64, %s632_s6, [#allocation4]  }
 0x35f   :  { %s473_s20 = scalar_lea.hbm %s633_s7, 16 }
 0x360   :  { %p474_p12 = scmp.ne.s32.totalorder %s633_s7, %s473_s20  ;;  %p477_p13 = scmp.lt.u32.totalorder %s473_s20, %s633_s7 }
 0x362   :  { %p479_p0 = pnand %p477_p13, %p474_p12 }
 0x3e3   :  { %v273_v58 = vpop.xlane.xlu1 %272 }
 0x3e4   :  { %v274_v59 = vrot.slane %v273_v58, 4 }
 0x3e6   :  { %v275_v60 = vadd.f32 %v274_v59, %v273_v58 }
 0x3e8   :  { %v276_v61 = vrot.slane %v275_v60, 2 }
 0x3ea   :  { %v277_v62 = vadd.f32 %v276_v61, %v275_v60 }
 0x3ec   :  { %v278_v63 = vrot.slane %v277_v62, 1 }
 0x3ee   :  { %v279_v0 = vadd.f32 %v278_v63, %v277_v62 }
 0x3f0   :  { %336 = vpush %v279_v0 }
 0x421   :  { %s337_s16 = spop %336 }
 0x422   :  { %282 = sst [smem:[#allocation12]] %s337_s16 }
 0x423   :  { %482 = shalt.err (!%p479_p0)
}
 0x424   :  { %s505_s24 = smov [#allocation12]  }
 0x425   :  { %300 = dma.smem_to_hbm %s505_s24, 16, %s633_s7, [#allocation5]  }
 0x426   :  { %489 = dma.done.wait [#allocation4], 64  }
 0x427   :  { %490 = vsyncadd [#allocation4], 4294967232 }
 0x428   :  { %491 = dma.done.wait [#allocation5], 16  }
 0x429   :  { %492 = vsyncadd [#allocation5], 4294967280 }
 0x42a   :  { %307 = sfence }
 0x42b   :  { %308 = vsyncpa [#allocation3], 1 }
 0x42c   :  { %309 = vsyncpa [#allocation7], 1 }
 0x42d   :  { %310 = vsyncpa [#allocation10], 1 }
 0x42e   :  { %311 = vsyncpa [#allocation4], 1 }
 0x42f   :  { %312 = vsyncpa [#allocation5], 1 }

</bundles_post_ra>
